<compile_context>
chip_gen: v7x
topology: tpu7x:2x2x1
jax: 0.10.0
libtpu: 0.0.40
codegen_flags: <defaults>
</compile_context>

<pallas_src>
import jax
import jax.numpy as jnp
from jax.experimental import pallas as pl
from jax.experimental.pallas import tpu as pltpu

NUM_STATES = 3   # config.num_states
LANES = 128      # lane-dense output width; wrapper slices to NUM_STATES


def _rand_bit(seed, x):
    # TODO(synk): np.random.choice([1, 2]) in the reference uses a persistent RNG
    # stream; here the bit is a deterministic hash of the per-row (seed, x).
    return jnp.bitwise_and(
        jnp.bitwise_xor(jnp.right_shift(seed, 16), jnp.bitwise_xor(seed, x)), 1)


def _select_action(x, l0, l1, seed):
    """Shared branch logic (per-row, shape (bb, 1) int32)."""
    one = jnp.float32(1.0)
    all_lt1 = jnp.logical_and(l0 < one, l1 < one)
    all_eq1 = jnp.logical_and(l0 == one, l1 == one)
    br_lam0 = jnp.logical_and(l0 > l1, l0 > one)
    br_lam1 = jnp.logical_and(l1 > l0, l1 > one)

    rbit = _rand_bit(seed, x)

    # Branch 1: all lambdas < 1 -> maximize time at state 0.
    act_lt1 = jnp.where(x == 0, jnp.where(rbit == 0, 1, 2), 0)
    # Branch 2: all lambdas == 1 -> any deterministic policy optimal.
    act_eq1 = jnp.where(x == 0, 1, jnp.where(x == 1, 0, 2))
    # Branch 3: lambdas[0] > lambdas[1] and lambdas[0] > 1 -> maximize state 1.
    act_b1 = jnp.where(x == 2, 0, 1)
    # Branch 4: lambdas[1] > lambdas[0] and lambdas[1] > 1 -> maximize state 2.
    act_b2 = jnp.where(x == 1, 0, 2)

    # TODO(synk): PyTorch forward leaves `action` undefined when no branch
    # matches (mixed crossing lambdas); we default to action 0.
    return jnp.where(all_lt1, act_lt1,
           jnp.where(all_eq1, act_eq1,
           jnp.where(br_lam0, act_b1,
           jnp.where(br_lam1, act_b2, 0))))


def _oracle_policy_kernel(x_ref, lam_ref, seed_ref, out_ref):
    x = x_ref[...]                       # (bb, 1) int32 state in {0, 1, 2}
    lam = lam_ref[...]                   # (bb, 2) float32
    l0 = lam[:, 0:1]
    l1 = lam[:, 1:2]
    seed = seed_ref[...]                 # (bb, 1) int32, non-negative

    action = _select_action(x, l0, l1, seed)              # (bb, 1) int32

    idx = jax.lax.broadcasted_iota(jnp.int32, out_ref.shape, 1)   # (bb, LANES)
    out_ref[...] = (idx == action).astype(jnp.float32)            # lane-dense one-hot


def oracle_policy(x, lambdas, seed):
    """x: int32 (B,), lambdas: float32 (B, 2), seed: int32 (B,)
    -> probs: float32 (B, NUM_STATES), one-hot per row."""
    B = x.shape[0]
    assert B % 8 == 0, "batch must be a multiple of 8 (sublane tiling)"
    bb = B if B <= 512 else 512
    assert B % bb == 0

    x2 = x.reshape(B, 1).astype(jnp.int32)
    s2 = seed.reshape(B, 1).astype(jnp.int32)
    lam = lambdas.astype(jnp.float32)

    out = pl.pallas_call(
        _oracle_policy_kernel,
        out_shape=jax.ShapeDtypeStruct((B, LANES), jnp.float32),
        grid=(B // bb,),
        in_specs=[
            pl.BlockSpec((bb, 1), lambda i: (i, 0)),      # x
            pl.BlockSpec((bb, 2), lambda i: (i, 0)),      # lambdas
            pl.BlockSpec((bb, 1), lambda i: (i, 0)),      # seed
        ],
        out_specs=pl.BlockSpec((bb, LANES), lambda i: (i, 0)),
        compiler_params=pltpu.CompilerParams(dimension_semantics=("parallel",)),
    )(x2, lam, s2)
    return out[:, :NUM_STATES]


def _oracle_policy_ref(x, lambdas, seed):
    """Pure-JAX reference with identical semantics (incl. the hash bit)."""
    x = x.astype(jnp.int32).reshape(-1, 1)
    seed = seed.astype(jnp.int32).reshape(-1, 1)
    lam = lambdas.astype(jnp.float32)
    l0 = lam[:, 0:1]
    l1 = lam[:, 1:2]
    action = _select_action(x, l0, l1, seed)
    idx = jnp.arange(NUM_STATES, dtype=jnp.int32)[None, :]
    return (idx == action).astype(jnp.float32)


if __name__ == "__main__":
    import numpy as np

    key = jax.random.PRNGKey(0)
    kx, kl, ks = jax.random.split(key, 3)

    B = 16
    x = jax.random.randint(kx, (B,), 0, NUM_STATES, dtype=jnp.int32)
    lambdas = jax.random.uniform(kl, (B, 2), minval=0.25, maxval=1.75,
                                 dtype=jnp.float32)
    # Pin a few rows so every branch is exercised deterministically.
    x = x.at[0].set(0)
    lambdas = lambdas.at[0].set(jnp.array([0.3, 0.7], dtype=jnp.float32))  # all < 1, x == 0
    lambdas = lambdas.at[1].set(jnp.array([1.0, 1.0], dtype=jnp.float32))  # all == 1
    lambdas = lambdas.at[2].set(jnp.array([1.5, 0.5], dtype=jnp.float32))  # lam0 > lam1 > 1
    lambdas = lambdas.at[3].set(jnp.array([0.5, 1.5], dtype=jnp.float32))  # lam1 > lam0 > 1
    seed = jax.random.randint(ks, (B,), 0, 2**31 - 1, dtype=jnp.int32)

    probs = oracle_policy(x, lambdas, seed)
    jax.block_until_ready(probs)

    ref = _oracle_policy_ref(x, lambdas, seed)
    assert probs.shape == (B, NUM_STATES) and probs.dtype == jnp.float32
    np.testing.assert_array_equal(np.asarray(probs), np.asarray(ref))
    assert bool(jnp.all(jnp.sum(probs, axis=-1) == 1.0))   # one-hot rows
    print("KERNEL_OK")
</pallas_src>

<mosaic_0001>
module attributes {stable_mosaic.version = 11 : i64} {
  func.func @_oracle_policy_kernel(%arg0: i32, %arg1: memref<16x1xi32, #tpu.memory_space<vmem>>, %arg2: memref<16x2xf32, #tpu.memory_space<vmem>>, %arg3: memref<16x1xi32, #tpu.memory_space<vmem>>, %arg4: memref<16x128xf32, #tpu.memory_space<vmem>>) attributes {dimension_semantics = [#tpu.dimension_semantics<parallel>], iteration_bounds = array<i64: 1>, scalar_prefetch = 0 : i64, scratch_operands = 0 : i64, tpu.core_type = #tpu.core_type<tc>, window_params = [{transform_indices = @transform_0, window_bounds = array<i64: 16, 1>}, {transform_indices = @transform_1, window_bounds = array<i64: 16, 2>}, {transform_indices = @transform_2, window_bounds = array<i64: 16, 1>}, {transform_indices = @transform_3, window_bounds = array<i64: 16, 128>}]} {
    %c0 = arith.constant 0 : index
    %c0_0 = arith.constant 0 : index
    %0 = vector.load %arg1[%c0, %c0_0] : memref<16x1xi32, #tpu.memory_space<vmem>>, vector<16x1xi32>
    %c0_1 = arith.constant 0 : index
    %c0_2 = arith.constant 0 : index
    %1 = vector.load %arg2[%c0_1, %c0_2] : memref<16x2xf32, #tpu.memory_space<vmem>>, vector<16x2xf32>
    %2 = vector.extract_strided_slice %1 {offsets = [0, 0], sizes = [16, 1], strides = [1, 1]} : vector<16x2xf32> to vector<16x1xf32>
    %3 = vector.extract_strided_slice %1 {offsets = [0, 1], sizes = [16, 1], strides = [1, 1]} : vector<16x2xf32> to vector<16x1xf32>
    %c0_3 = arith.constant 0 : index
    %c0_4 = arith.constant 0 : index
    %4 = vector.load %arg3[%c0_3, %c0_4] : memref<16x1xi32, #tpu.memory_space<vmem>>, vector<16x1xi32>
    %cst = arith.constant 1.000000e+00 : f32
    %5 = vector.broadcast %cst : f32 to vector<16x1xf32>
    %6 = arith.cmpf olt, %2, %5 : vector<16x1xf32>
    %cst_5 = arith.constant 1.000000e+00 : f32
    %7 = vector.broadcast %cst_5 : f32 to vector<16x1xf32>
    %8 = arith.cmpf olt, %3, %7 : vector<16x1xf32>
    %9 = arith.andi %6, %8 : vector<16x1xi1>
    %cst_6 = arith.constant 1.000000e+00 : f32
    %10 = vector.broadcast %cst_6 : f32 to vector<16x1xf32>
    %11 = arith.cmpf oeq, %2, %10 : vector<16x1xf32>
    %cst_7 = arith.constant 1.000000e+00 : f32
    %12 = vector.broadcast %cst_7 : f32 to vector<16x1xf32>
    %13 = arith.cmpf oeq, %3, %12 : vector<16x1xf32>
    %14 = arith.andi %11, %13 : vector<16x1xi1>
    %15 = arith.cmpf ogt, %2, %3 : vector<16x1xf32>
    %cst_8 = arith.constant 1.000000e+00 : f32
    %16 = vector.broadcast %cst_8 : f32 to vector<16x1xf32>
    %17 = arith.cmpf ogt, %2, %16 : vector<16x1xf32>
    %18 = arith.andi %15, %17 : vector<16x1xi1>
    %19 = arith.cmpf ogt, %3, %2 : vector<16x1xf32>
    %cst_9 = arith.constant 1.000000e+00 : f32
    %20 = vector.broadcast %cst_9 : f32 to vector<16x1xf32>
    %21 = arith.cmpf ogt, %3, %20 : vector<16x1xf32>
    %22 = arith.andi %19, %21 : vector<16x1xi1>
    %c16_i32 = arith.constant 16 : i32
    %23 = vector.broadcast %c16_i32 : i32 to vector<16x1xi32>
    %24 = arith.shrsi %4, %23 : vector<16x1xi32>
    %25 = arith.xori %4, %0 : vector<16x1xi32>
    %26 = arith.xori %24, %25 : vector<16x1xi32>
    %c1_i32 = arith.constant 1 : i32
    %27 = vector.broadcast %c1_i32 : i32 to vector<16x1xi32>
    %28 = arith.andi %26, %27 : vector<16x1xi32>
    %c0_i32 = arith.constant 0 : i32
    %29 = vector.broadcast %c0_i32 : i32 to vector<16x1xi32>
    %30 = arith.cmpi eq, %0, %29 : vector<16x1xi32>
    %c0_i32_10 = arith.constant 0 : i32
    %31 = vector.broadcast %c0_i32_10 : i32 to vector<16x1xi32>
    %32 = arith.cmpi eq, %28, %31 : vector<16x1xi32>
    %c1_i32_11 = arith.constant 1 : i32
    %c2_i32 = arith.constant 2 : i32
    %33 = vector.broadcast %c1_i32_11 : i32 to vector<16x1xi32>
    %34 = vector.broadcast %c2_i32 : i32 to vector<16x1xi32>
    %35 = arith.select %32, %33, %34 : vector<16x1xi1>, vector<16x1xi32>
    %c0_i32_12 = arith.constant 0 : i32
    %36 = vector.broadcast %c0_i32_12 : i32 to vector<16x1xi32>
    %37 = arith.select %30, %35, %36 : vector<16x1xi1>, vector<16x1xi32>
    %c0_i32_13 = arith.constant 0 : i32
    %38 = vector.broadcast %c0_i32_13 : i32 to vector<16x1xi32>
    %39 = arith.cmpi eq, %0, %38 : vector<16x1xi32>
    %c1_i32_14 = arith.constant 1 : i32
    %40 = vector.broadcast %c1_i32_14 : i32 to vector<16x1xi32>
    %41 = arith.cmpi eq, %0, %40 : vector<16x1xi32>
    %c0_i32_15 = arith.constant 0 : i32
    %c2_i32_16 = arith.constant 2 : i32
    %42 = vector.broadcast %c0_i32_15 : i32 to vector<16x1xi32>
    %43 = vector.broadcast %c2_i32_16 : i32 to vector<16x1xi32>
    %44 = arith.select %41, %42, %43 : vector<16x1xi1>, vector<16x1xi32>
    %c1_i32_17 = arith.constant 1 : i32
    %45 = vector.broadcast %c1_i32_17 : i32 to vector<16x1xi32>
    %46 = arith.select %39, %45, %44 : vector<16x1xi1>, vector<16x1xi32>
    %c2_i32_18 = arith.constant 2 : i32
    %47 = vector.broadcast %c2_i32_18 : i32 to vector<16x1xi32>
    %48 = arith.cmpi eq, %0, %47 : vector<16x1xi32>
    %c0_i32_19 = arith.constant 0 : i32
    %c1_i32_20 = arith.constant 1 : i32
    %49 = vector.broadcast %c0_i32_19 : i32 to vector<16x1xi32>
    %50 = vector.broadcast %c1_i32_20 : i32 to vector<16x1xi32>
    %51 = arith.select %48, %49, %50 : vector<16x1xi1>, vector<16x1xi32>
    %c1_i32_21 = arith.constant 1 : i32
    %52 = vector.broadcast %c1_i32_21 : i32 to vector<16x1xi32>
    %53 = arith.cmpi eq, %0, %52 : vector<16x1xi32>
    %c0_i32_22 = arith.constant 0 : i32
    %c2_i32_23 = arith.constant 2 : i32
    %54 = vector.broadcast %c0_i32_22 : i32 to vector<16x1xi32>
    %55 = vector.broadcast %c2_i32_23 : i32 to vector<16x1xi32>
    %56 = arith.select %53, %54, %55 : vector<16x1xi1>, vector<16x1xi32>
    %c0_i32_24 = arith.constant 0 : i32
    %57 = vector.broadcast %c0_i32_24 : i32 to vector<16x1xi32>
    %58 = arith.select %22, %56, %57 : vector<16x1xi1>, vector<16x1xi32>
    %59 = arith.select %18, %51, %58 : vector<16x1xi1>, vector<16x1xi32>
    %60 = arith.select %14, %46, %59 : vector<16x1xi1>, vector<16x1xi32>
    %61 = arith.select %9, %37, %60 : vector<16x1xi1>, vector<16x1xi32>
    %62 = tpu.iota {dimensions = array<i32: 1>} : vector<16x128xi32>
    %63 = vector.broadcast %61 : vector<16x1xi32> to vector<16x128xi32>
    %64 = arith.cmpi eq, %62, %63 : vector<16x128xi32>
    %65 = arith.extui %64 : vector<16x128xi1> to vector<16x128xi32>
    %66 = arith.sitofp %65 : vector<16x128xi32> to vector<16x128xf32>
    %c0_25 = arith.constant 0 : index
    %c0_26 = arith.constant 0 : index
    %67 = vector.load %arg4[%c0_25, %c0_26] : memref<16x128xf32, #tpu.memory_space<vmem>>, vector<16x128xf32>
    tpu.vector_store %arg4[%c0_25, %c0_26], %66 {strides = array<i32>} : memref<16x128xf32, #tpu.memory_space<vmem>>, vector<16x128xf32>,
    return
  }
  func.func @transform_0(%arg0: i32) -> (i32, i32) {
    %c0_i32 = arith.constant 0 : i32
    %c0_i32_0 = arith.constant 0 : i32
    return %arg0, %c0_i32 : i32, i32
  }
  func.func @transform_1(%arg0: i32) -> (i32, i32) {
    %c0_i32 = arith.constant 0 : i32
    %c0_i32_0 = arith.constant 0 : i32
    return %arg0, %c0_i32 : i32, i32
  }
  func.func @transform_2(%arg0: i32) -> (i32, i32) {
    %c0_i32 = arith.constant 0 : i32
    %c0_i32_0 = arith.constant 0 : i32
    return %arg0, %c0_i32 : i32, i32
  }
  func.func @transform_3(%arg0: i32) -> (i32, i32) {
    %c0_i32 = arith.constant 0 : i32
    %c0_i32_0 = arith.constant 0 : i32
    return %arg0, %c0_i32 : i32, i32
  }
}

</mosaic_0001>

<bundles_post_ra>
// kernel: tpu_custom_call.1
= control target key start
LH: loop header
LB: loop body
LE: loop exit
PB: predicated region body
PF: predicated region fallthrough
CT: control target
= control target key end

     0   :  { %s180_s16 = smov 1   ;;  %v181_v3 = vmov 2   ;;  %s312_s0 = inlined_call_operand.vmem [shape: s32[16,1], index: 0, kind: input, shape index: {}]   ;;  %s313_s1 = inlined_call_operand.vmem [shape: f32[16,2], index: 1, kind: input, shape index: {}]   ;;  %s314_s2 = inlined_call_operand.vmem [shape: s32[16,1], index: 2, kind: input, shape index: {}]   ;;  %s315_s3 = inlined_call_operand.hbm [shape: f32[16,128], index: 3, kind: output, shape index: {}]  }
   0x1   :  { %v212_v0 = vld [vmem:[%s313_s1] sm:$0xff]  ;;  %v225_v2 = vld [vmem:[%s312_s0 + $0x8] sm:$0xff] }
   0x2   :  { %v217_v1 = vld [vmem:[%s312_s0] sm:$0xff]  ;;  %59 = vrot.lane.b32.xlu0 %v212_v0, %s180_s16  ;;  %v231_v5 = vld [vmem:[%s313_s1 + $0x8] sm:$0xff]  ;;  %vm86_vm2 = vcmp.eq.s32.totalorder %v225_v2, 1 }
   0x3   :  { %vm85_vm0 = vcmp.eq.s32.totalorder %v217_v1, 1  ;;  %vm77_vm1 = vcmp.eq.s32.totalorder %v217_v1, 0 }
   0x4   :  { %v87_v4 = vsel %vm85_vm0, 0, %v181_v3 }
   0x5   :  { %8 = vsyncpa [#allocation3], 0  ;;  %95 = vrot.lane.b32.xlu1 %v87_v4, %s180_s16  ;;  %v236_v6 = vsel %vm77_vm1, 1, %v87_v4  ;;  %v182_v7 = vmov 0   ;;  %v239_v8 = vsel %vm86_vm2, 0, %v181_v3  ;;  %vm33_vm3 = vcmp.eq.f32.partialorder %v212_v0, 1.0 }
   0x6   :  { %154 = vset.pattern.permute.xlu0 %v182_v7  ;;  %155 = vset.pattern.permute.xlu1 %v182_v7  ;;  %s183_s0 = smov 127   ;;  %vm34_vm4 = vcmp.eq.f32.partialorder %v231_v5, 1.0  ;;  %v35_v9 = vsel %vm33_vm3, 1, %v182_v7  ;;  %vm21_vm5 = vcmp.lt.f32.partialorder %v212_v0, 1.0  ;;  %vm316_vm6 = vcmp.lt.f32.partialorder %v231_v5, 1.0  ;;  %v19_v19 = vld [vmem:[%s314_s2] sm:$0xff] }
   0x7   :  { %61 = vrot.lane.b32.xlu0 %v231_v5, %s180_s16  ;;  %v36_v10 = vsel %vm34_vm4, 1, %v182_v7  ;;  %v23_v11 = vsel %vm21_vm5, 1, %v182_v7  ;;  %v24_v12 = vsel %vm316_vm6, 1, %v182_v7  ;;  %vm55_vm7 = vcmp.gt.f32.partialorder %v212_v0, 1.0  ;;  %v20_v23 = vld [vmem:[%s314_s2 + $0x8] sm:$0xff]  ;;  %s185_s2 = smov [#allocation2]  }
   0x8   :  { %vm56_vm10 = vcmp.gt.f32.partialorder %v231_v5, 1.0  ;;  %v69_v20 = vshra.s32 %v19_v19, 16  ;;  %v71_v21 = vxor.u32 %v19_v19, %v217_v1  ;;  %v70_v26 = vshra.s32 %v20_v23, 16  ;;  %s132_s24 = sshll.u32 %s185_s2, 4  ;;  %s133_s24 = int_to_ptr.vmem [resolvable:$true] %s132_s24 }
   0x9   :  { %97 = vrot.lane.b32.xlu1 %v239_v8, %s180_s16  ;;  %v72_v27 = vxor.u32 %v20_v23, %v225_v2  ;;  %vm91_vm14 = vcmp.eq.s32.totalorder %v217_v1, 2  ;;  %v184_v35 = vmov 1   ;;  %v111_v51 = vlaneseq  ;;  %s156_s25 = scalar_lea.vmem %s133_s24, 256  ;;  %p161_p1 = scmp.lt.s32.totalorder %s133_s24, %s133_s24 }
   0xa   :  { %v73_v24 = vxor.u32 %v71_v21, %v69_v20  ;;  %v93_v36 = vsel %vm91_vm14, 0, %v184_v35  ;;  %v186_v54 = vmov 0.0   ;;  %p157_p0 = scmp.ne.s32.totalorder %s133_s24, %s156_s25  ;;  %p162_p2 = scmp.lt.s32.totalorder %s156_s25, %s156_s25 }
   0xb   :  { %47 = vrot.lane.b32.xlu0 %v212_v0, %s183_s0  ;;  %v74_v30 = vxor.u32 %v72_v27, %v70_v26  ;;  %v112_v52 = vand.u32 127, %v111_v51 }
   0xc   :  { %v75_v29 = vand.u32 1, %v73_v24  ;;  %p163_p3 = por %p162_p2, %p161_p1 }
   0xd   :  { %49 = vrot.lane.b32.xlu1 %v231_v5, %s183_s0  ;;  %v76_v33 = vand.u32 1, %v74_v30 }
   0xe   :  { %vm79_vm13 = vcmp.eq.s32.totalorder %v75_v29, 0  ;;  %p164_p4 = pnand %p163_p3, %p157_p0 }
   0xf   :  { %37 = vrot.lane.b32.xlu0 %v35_v9, %s183_s0  ;;  %v81_v34 = vsel %vm79_vm13, 1, %v181_v3 }
  0x10   :  { %v83_v38 = vsel %vm77_vm1, %v81_v34, 0 }
  0x11   :  { %39 = vrot.lane.b32.xlu1 %v36_v10, %s183_s0 }
  0x13   :  { %25 = vrot.lane.b32.xlu0 %v23_v11, %s183_s0 }
  0x15   :  { %27 = vrot.lane.b32.xlu1 %v24_v12, %s183_s0 }
  0x74   :  { %v60_v13 = vpop.permute.xlu0 %59 }
  0x75   :  { %vm65_vm8 = vcmp.gt.f32.partialorder %v212_v0, %v60_v13 }
  0x76   :  { %vm67_vm9 = vmand %vm65_vm8, %vm55_vm7  ;;  %vm80_vm8 = vcmp.eq.s32.totalorder %v76_v33, 0 }
  0x77   :  { %v96_v14 = vpop.permute.xlu1 %95  ;;  %v82_v41 = vsel %vm80_vm8, 1, %v181_v3 }
  0x78   :  { %v99_v15 = vsel %vm67_vm9, %v96_v14, 0 }
  0x79   :  { %v62_v16 = vpop.permute.xlu0 %61  ;;  %101 = vrot.lane.b32.xlu0 %v99_v15, %s183_s0 }
  0x7a   :  { %vm66_vm11 = vcmp.gt.f32.partialorder %v231_v5, %v62_v16 }
  0x7b   :  { %vm68_vm12 = vmand %vm66_vm11, %vm56_vm10  ;;  %v98_v17 = vpop.permute.xlu1 %97  ;;  %vm92_vm11 = vcmp.eq.s32.totalorder %v225_v2, 2 }
  0x7c   :  { %v100_v18 = vsel %vm68_vm12, %v98_v17, 0  ;;  %vm78_vm12 = vcmp.eq.s32.totalorder %v225_v2, 0  ;;  %v94_v42 = vsel %vm92_vm11, 0, %v184_v35 }
  0x7d   :  { %103 = vrot.lane.b32.xlu1 %v100_v18, %s183_s0  ;;  %v48_v22 = vpop.permute.xlu0 %47  ;;  %v90_v44 = vsel %vm78_vm12, 1, %v239_v8  ;;  %v84_v47 = vsel %vm78_vm12, %v82_v41, 0 }
  0x7e   :  { %vm53_vm15 = vcmp.gt.f32.partialorder %v212_v0, %v48_v22 }
  0x7f   :  { %v50_v25 = vpop.permute.xlu1 %49  ;;  %vm57_vm9 = vmand %vm53_vm15, %vm55_vm7  ;;  %vm317_vm15 = vcmp.lt.f32.partialorder %v231_v5, 1.0 }
  0x80   :  { %vm54_vm14 = vcmp.gt.f32.partialorder %v231_v5, %v50_v25 }
  0x81   :  { %v38_v28 = vpop.permute.xlu0 %37 }
  0x82   :  { %vm41_vm2 = vcmp.ne.s32.totalorder %v38_v28, 0 }
  0x83   :  { %v40_v31 = vpop.permute.xlu1 %39  ;;  %vm43_vm13 = vmand %vm33_vm3, %vm41_vm2 }
  0x84   :  { %vm42_vm7 = vcmp.ne.s32.totalorder %v40_v31, 0 }
  0x85   :  { %v26_v32 = vpop.permute.xlu0 %25  ;;  %vm44_vm3 = vmand %vm34_vm4, %vm42_vm7 }
  0x86   :  { %vm29_vm0 = vcmp.ne.s32.totalorder %v26_v32, 0 }
  0x87   :  { %v28_v37 = vpop.permute.xlu1 %27  ;;  %vm31_vm6 = vmand %vm21_vm5, %vm29_vm0 }
  0x88   :  { %vm30_vm1 = vcmp.ne.s32.totalorder %v28_v37, 0  ;;  %vm58_vm5 = vmand %vm54_vm14, %vm56_vm10 }
  0x89   :  { %vm32_vm0 = vmand %vm317_vm15, %vm30_vm1 }
  0xeb   :  { %v102_v39 = vpop.permute.xlu0 %101 }
  0xec   :  { %v105_v40 = vsel %vm57_vm9, %v93_v36, %v102_v39 }
  0xed   :  { %v107_v43 = vsel %vm43_vm13, %v236_v6, %v105_v40 }
  0xee   :  { %v109_v45 = vsel %vm31_vm6, %v83_v38, %v107_v43 }
  0xef   :  { %v104_v46 = vpop.permute.xlu1 %103  ;;  %114 = vperm.xlu0 %154, %v109_v45  }
  0xf0   :  { %v106_v48 = vsel %vm58_vm5, %v94_v42, %v104_v46 }
  0xf1   :  { %v108_v49 = vsel %vm44_vm3, %v90_v44, %v106_v48 }
  0xf2   :  { %v110_v50 = vsel %vm32_vm0, %v84_v47, %v108_v49 }
  0xf3   :  { %117 = vperm.xlu1 %155, %v110_v50  }
 0x16e   :  { %v115_v53 = vpop.permute.xlu0 %114 }
 0x16f   :  { %vm119_vm6 = vcmp.eq.s32.totalorder %v112_v52, %v115_v53 }
 0x170   :  { %v143_v55 = vsel %vm119_vm6, 1.0, %v186_v54 }
 0x171   :  { %125 = vst [vmem:[#allocation2] sm:$0xff] %v143_v55 }
 0x172   :  { %v118_v56 = vpop.permute.xlu1 %117 }
 0x173   :  { %vm120_vm10 = vcmp.eq.s32.totalorder %v112_v52, %v118_v56 }
 0x174   :  { %v144_v57 = vsel %vm120_vm10, 1.0, %v186_v54 }
 0x175   :  { %126 = vst [vmem:[#allocation2 + $0x8] sm:$0xff] %v144_v57 }
 0x176   :  { %167 = shalt.err (!%p164_p4)
}
 0x177   :  { %s168_s28 = scalar_lea.hbm %s315_s3, 256 }
 0x178   :  { %p169_p5 = scmp.ne.s32.totalorder %s315_s3, %s168_s28  ;;  %p172_p6 = scmp.lt.u32.totalorder %s168_s28, %s315_s3 }
 0x17a   :  { %p174_p7 = pnand %p172_p6, %p169_p5 }
 0x17c   :  { %177 = shalt.err (!%p174_p7)
}
 0x17d   :  { %s187_s6 = smov 128   ;;  %s188_s7 = smov 8  }
 0x17e   :  { %138 = dma.vmem_to_hbm [thread:$0]  %s133_s24, 256, %s315_s3, [#allocation3], %s187_s6, %s187_s6, %s188_s7  }
 0x17f   :  { %178 = dma.done.wait [#allocation3], 256  }
 0x180   :  { %179 = vsyncadd [#allocation3], 4294967040 }
 0x181   :  { %142 = vsyncpa [#allocation3], 1 }

</bundles_post_ra>
